<compile_context>
chip_gen: v7x
topology: tpu7x:2x2x1
jax: 0.10.0
libtpu: 0.0.40
codegen_flags: <defaults>
</compile_context>

<pallas_src>
import math
import functools

import jax
import jax.numpy as jnp
from jax.experimental import pallas as pl
from jax.experimental.pallas import tpu as pltpu

STYLE_DIM = 512
LIP_DIM = 20
POSE_DIM = 6


def _latent_kernel(wa_ref, wat_ref, m_ref, b_ref, out_ref):
    """latent_poseD = wa + wa_t @ M + b  (whole affine chain pre-folded into M, b)."""
    out_ref[...] = (
        wa_ref[...]
        + jnp.dot(wat_ref[...], m_ref[...], preferred_element_type=jnp.float32)
        + b_ref[...]
    )


def _equal_linear_params(key, in_dim, out_dim):
    """EqualLinear params (StyleGAN2, activation=None, lr_mul=1, bias_init=0).

    Weight is pre-scaled by 1/sqrt(in_dim) and pre-transposed to (in, out);
    bias is (1, out).
    """
    w = jax.random.normal(key, (out_dim, in_dim), dtype=jnp.float32)
    scale = 1.0 / math.sqrt(in_dim)
    return (w * scale).T, jnp.zeros((1, out_dim), dtype=jnp.float32)


def _compose_affine(layers):
    """Fold a stack of affine layers [(W_i, b_i)] (x -> x @ W + b) into one (M, b)."""
    m, b = layers[0]
    for w, bb in layers[1:]:
        m = m @ w
        b = b @ w + bb
    return m, b


def init_params(seed=0):
    key = jax.random.PRNGKey(seed)
    keys = jax.random.split(key, 16)
    params = {}

    # self.fc : 4 x EqualLinear(512, 512)
    params["fc"] = [_equal_linear_params(keys[i], STYLE_DIM, STYLE_DIM) for i in range(4)]
    # self.lip_fc : EqualLinear(512,512), EqualLinear(512,512), EqualLinear(512,20)
    params["lip_fc"] = [
        _equal_linear_params(keys[4], STYLE_DIM, STYLE_DIM),
        _equal_linear_params(keys[5], STYLE_DIM, STYLE_DIM),
        _equal_linear_params(keys[6], STYLE_DIM, LIP_DIM),
    ]
    # self.pose_fc : EqualLinear(512,512), EqualLinear(512,512), EqualLinear(512,6)
    params["pose_fc"] = [
        _equal_linear_params(keys[7], STYLE_DIM, STYLE_DIM),
        _equal_linear_params(keys[8], STYLE_DIM, STYLE_DIM),
        _equal_linear_params(keys[9], STYLE_DIM, POSE_DIM),
    ]
    # self.direction_lipnonlip.weight : randn(512, lip_dim + pose_dim)
    params["dir_weight"] = jax.random.normal(
        keys[10], (STYLE_DIM, LIP_DIM + POSE_DIM), dtype=jnp.float32
    )

    # ---- fold the fully-affine chain (done once, at init) -------------------
    # Path lip : fc -> lip_fc  gives   shared -> alpha_lip  = wa_t @ A_lip + c_lip
    # Path pose: fc -> pose_fc gives   shared -> alpha_pose = wa_t @ A_pose + c_pose
    a_lip, c_lip = _compose_affine(params["fc"] + params["lip_fc"])     # (512,20),(1,20)
    a_pose, c_pose = _compose_affine(params["fc"] + params["pose_fc"])  # (512,6), (1,6)

    # Direction: Q, _ = qr(W + 1e-8); directions = alpha @ Q.T  (QR hoisted to init)
    q, _ = jnp.linalg.qr(params["dir_weight"] + 1e-08)  # (512, 26), reduced mode
    q_t = q.T                                           # (26, 512)
    qlip_t = q_t[:LIP_DIM]                              # (20, 512)
    qpose_t = q_t[LIP_DIM:]                             # (6, 512)

    # directions = alpha_lip @ qlip_t + alpha_pose @ qpose_t
    #            = wa_t @ (A_lip @ qlip_t + A_pose @ qpose_t)
    #              + (c_lip @ qlip_t + c_pose @ qpose_t)
    collapsed_m = a_lip @ qlip_t + a_pose @ qpose_t                     # (512, 512) f32
    params["collapsed_m_f32"] = collapsed_m
    params["collapsed_m"] = collapsed_m.astype(jnp.bfloat16)            # weight DMA halved
    params["collapsed_b"] = c_lip @ qlip_t + c_pose @ qpose_t           # (1, 512) f32 (tiny)
    return params


def _default_col_blocks():
    """Split M's column dim across the 2 TensorCores only on v7x-class chips."""
    try:
        kind = jax.devices()[0].device_kind.lower()
        if "v7" in kind:
            return 2
    except Exception:  # pragma: no cover - conservative fallback
        pass
    return 1


def generator_latent_forward(wa, wa_t, m_bf16, b, *, col_blocks=None):
    """Pallas implementation of the latent-direction part of Generator_using_ADAIN.forward.

    wa, wa_t : (B, 512) f32 encoder latents; m_bf16 : (512, 512) bf16 folded weight;
    b : (1, 512) f32 folded bias.  Returns latent_poseD (B, 512) f32.
    """
    B = wa.shape[0]
    N = m_bf16.shape[1]
    if col_blocks is None:
        col_blocks = _default_col_blocks()
    if N % (col_blocks * 128) != 0:
        col_blocks = 1
    tn = N // col_blocks

    # Activation in bf16 (native MXU input); residual wa and bias stay f32.
    wa_t_bf16 = wa_t.astype(jnp.bfloat16)

    # Advisory cost so XLA can overlap this sub-µs call with surrounding HLO.
    cost = pl.CostEstimate(
        flops=2 * B * STYLE_DIM * N + 2 * B * N,
        transcendentals=0,
        bytes_accessed=(STYLE_DIM * N * 2          # M (bf16)
                        + B * STYLE_DIM * 2        # wa_t (bf16)
                        + B * N * 4                # wa (f32)
                        + N * 4                    # b (f32)
                        + B * N * 4),              # out (f32)
    )

    grid_spec = pltpu.PrefetchScalarGridSpec(
        num_scalar_prefetch=0,
        grid=(col_blocks,),
        in_specs=[
            pl.BlockSpec((B, tn), lambda j: (0, j)),           # wa (column slice)
            pl.BlockSpec((B, STYLE_DIM), lambda j: (0, 0)),    # wa_t (full, reused)
            pl.BlockSpec((STYLE_DIM, tn), lambda j: (0, j)),   # M column slab
            pl.BlockSpec((1, tn), lambda j: (0, j)),           # bias column slice
        ],
        out_specs=pl.BlockSpec((B, tn), lambda j: (0, j)),
    )

    out = pl.pallas_call(
        _latent_kernel,
        out_shape=jax.ShapeDtypeStruct((B, N), jnp.float32),
        grid_spec=grid_spec,
        compiler_params=pltpu.CompilerParams(dimension_semantics=("parallel",)),
        cost_estimate=cost,
    )(wa, wa_t_bf16, m_bf16, b)

    # TODO(synk): self.dec (Synthesis_with_ADAIN) would consume `out` (+ encoder feats)
    #             here to produce img_recon; its definition is not provided.
    return out


def _reference(wa, wa_t, params):
    """Pure-JAX layered f32 reference of the original forward math."""
    x = wa_t
    for w, b in params["fc"]:
        x = x @ w + b
    lip = x
    for w, b in params["lip_fc"]:
        lip = lip @ w + b
    pose = x
    for w, b in params["pose_fc"]:
        pose = pose @ w + b
    alpha = jnp.concatenate([lip, pose], axis=-1)             # (B, 26)
    q, _ = jnp.linalg.qr(params["dir_weight"] + 1e-08)        # (512, 26)
    directions = alpha @ q.T                                   # (B, 512)
    return wa + directions


if __name__ == "__main__":
    B = 2
    key = jax.random.PRNGKey(0)
    k_wa, k_wat = jax.random.split(key)
    # Encoder latents (stand-in for self.enc(img_source, img_drive) outputs).
    wa = jax.random.normal(k_wa, (B, STYLE_DIM), dtype=jnp.float32)
    wa_t = jax.random.normal(k_wat, (B, STYLE_DIM), dtype=jnp.float32)

    params = init_params(seed=0)
    m_bf16 = jax.block_until_ready(params["collapsed_m"])
    b = jax.block_until_ready(params["collapsed_b"])

    fwd = jax.jit(functools.partial(generator_latent_forward))
    latent_poseD = fwd(wa, wa_t, m_bf16, b)
    jax.block_until_ready(latent_poseD)
    assert latent_poseD.shape == (B, STYLE_DIM)

    # 1) Exact-math check: kernel vs the same bf16-folded computation in plain jnp.
    ref_bf16 = (
        wa
        + jnp.dot(wa_t.astype(jnp.bfloat16), m_bf16, preferred_element_type=jnp.float32)
        + b
    )
    err_kernel = float(jnp.max(jnp.abs(latent_poseD - ref_bf16)))
    assert err_kernel < 1e-3, f"kernel-vs-bf16-ref max abs err {err_kernel}"

    # 2) Semantics check: kernel vs the layered f32 reference (bf16 weight tolerance).
    ref_f32 = _reference(wa, wa_t, params)
    err_sem = float(jnp.max(jnp.abs(latent_poseD - ref_f32)))
    assert err_sem < 5e-2, f"kernel-vs-f32-ref max abs err {err_sem}"

    print("KERNEL_OK")
</pallas_src>

<mosaic_0001>
module attributes {stable_mosaic.version = 11 : i64} {
  func.func @_latent_kernel(%arg0: i32, %arg1: memref<2x512xf32, #tpu.memory_space<vmem>>, %arg2: memref<2x512xbf16, #tpu.memory_space<vmem>>, %arg3: memref<512x512xbf16, #tpu.memory_space<vmem>>, %arg4: memref<1x512xf32, #tpu.memory_space<vmem>>, %arg5: memref<2x512xf32, #tpu.memory_space<vmem>>) attributes {dimension_semantics = [#tpu.dimension_semantics<parallel>], iteration_bounds = array<i64: 1>, scalar_prefetch = 0 : i64, scratch_operands = 0 : i64, tpu.core_type = #tpu.core_type<tc>, window_params = [{transform_indices = @transform_0, window_bounds = array<i64: 2, 512>}, {pipeline_mode = #tpu.pipeline_mode<synchronous>, transform_indices = @transform_1, window_bounds = array<i64: 2, 512>}, {transform_indices = @transform_2, window_bounds = array<i64: 512, 512>}, {transform_indices = @transform_3, window_bounds = array<i64: 1, 512>}, {transform_indices = @transform_4, window_bounds = array<i64: 2, 512>}]} {
    %c0 = arith.constant 0 : index
    %c0_0 = arith.constant 0 : index
    %0 = vector.load %arg1[%c0, %c0_0] : memref<2x512xf32, #tpu.memory_space<vmem>>, vector<2x512xf32>
    %c0_1 = arith.constant 0 : index
    %c0_2 = arith.constant 0 : index
    %1 = vector.load %arg2[%c0_1, %c0_2] : memref<2x512xbf16, #tpu.memory_space<vmem>>, vector<2x512xbf16>
    %c0_3 = arith.constant 0 : index
    %c0_4 = arith.constant 0 : index
    %2 = vector.load %arg3[%c0_3, %c0_4] : memref<512x512xbf16, #tpu.memory_space<vmem>>, vector<512x512xbf16>
    %cst = arith.constant dense<0.000000e+00> : vector<2x512xf32>
    %3 = tpu.matmul %1, %2, %cst {dimension_numbers = #tpu.dot_dimension_numbers<[1], [0], [0], [1], [0, 0, 1, 1], [], []>} : vector<2x512xbf16>, vector<512x512xbf16>, vector<2x512xf32> -> vector<2x512xf32>
    %4 = arith.addf %0, %3 : vector<2x512xf32>
    %c0_5 = arith.constant 0 : index
    %c0_6 = arith.constant 0 : index
    %5 = vector.load %arg4[%c0_5, %c0_6] : memref<1x512xf32, #tpu.memory_space<vmem>>, vector<1x512xf32>
    %6 = vector.broadcast %5 : vector<1x512xf32> to vector<2x512xf32>
    %7 = arith.addf %4, %6 : vector<2x512xf32>
    %c0_7 = arith.constant 0 : index
    %c0_8 = arith.constant 0 : index
    %8 = vector.load %arg5[%c0_7, %c0_8] : memref<2x512xf32, #tpu.memory_space<vmem>>, vector<2x512xf32>
    tpu.vector_store %arg5[%c0_7, %c0_8], %7 {strides = array<i32>} : memref<2x512xf32, #tpu.memory_space<vmem>>, vector<2x512xf32>,
    return
  }
  func.func @transform_0(%arg0: i32) -> (i32, i32) {
    %c0_i32 = arith.constant 0 : i32
    %c0_i32_0 = arith.constant 0 : i32
    return %c0_i32, %arg0 : i32, i32
  }
  func.func @transform_1(%arg0: i32) -> (i32, i32) {
    %c0_i32 = arith.constant 0 : i32
    %c0_i32_0 = arith.constant 0 : i32
    %c0_i32_1 = arith.constant 0 : i32
    return %c0_i32, %c0_i32_0 : i32, i32
  }
  func.func @transform_2(%arg0: i32) -> (i32, i32) {
    %c0_i32 = arith.constant 0 : i32
    %c0_i32_0 = arith.constant 0 : i32
    return %c0_i32, %arg0 : i32, i32
  }
  func.func @transform_3(%arg0: i32) -> (i32, i32) {
    %c0_i32 = arith.constant 0 : i32
    %c0_i32_0 = arith.constant 0 : i32
    return %c0_i32, %arg0 : i32, i32
  }
  func.func @transform_4(%arg0: i32) -> (i32, i32) {
    %c0_i32 = arith.constant 0 : i32
    %c0_i32_0 = arith.constant 0 : i32
    return %c0_i32, %arg0 : i32, i32
  }
}

</mosaic_0001>

<bundles_post_ra>
// kernel: generator_latent_forward.1
= control target key start
LH: loop header
LB: loop body
LE: loop exit
PB: predicated region body
PF: predicated region fallthrough
CT: control target
= control target key end

     0   :  { %9 = vsyncpa [#allocation3], 0  ;;  %s1532_s0 = inlined_call_operand.vmem [shape: f32[2,512], index: 0, kind: input, shape index: {}]   ;;  %s1533_s1 = inlined_call_operand.vmem [shape: bf16[2,512], index: 1, kind: input, shape index: {}]   ;;  %s1534_s2 = inlined_call_operand.hbm [shape: bf16[512,512], index: 2, kind: input, shape index: {}]   ;;  %s1535_s3 = inlined_call_operand.vmem [shape: f32[1,512], index: 3, kind: input, shape index: {}]   ;;  %s1536_s4 = inlined_call_operand.hbm [shape: f32[2,512], index: 4, kind: output, shape index: {}]  }
   0x1   :  { %10 = vsyncpa [#allocation4], 0  ;;  %s1454_s15 = smov [#allocation2]   ;;  %s1406_s19 = scalar_lea.hbm %s1534_s2, 16384 }
   0x2   :  { %s20_s16 = sshll.u32 %s1454_s15, 4  ;;  %p1407_p0 = scmp.ne.s32.totalorder %s1534_s2, %s1406_s19  ;;  %s21_s16 = int_to_ptr.vmem [resolvable:$true] %s20_s16 }
   0x3   :  { %p1410_p1 = scmp.lt.u32.totalorder %s1406_s19, %s1534_s2 }
   0x5   :  { %p1412_p2 = pnand %p1410_p1, %p1407_p0 }
   0x7   :  { %1415 = shalt.err (!%p1412_p2)
}
   0x8   :  { %s1416_s24 = scalar_lea.vmem %s21_s16, 16384  ;;  %p1421_p4 = scmp.lt.s32.totalorder %s21_s16, %s21_s16 }
   0x9   :  { %p1417_p3 = scmp.ne.s32.totalorder %s21_s16, %s1416_s24  ;;  %p1422_p5 = scmp.lt.s32.totalorder %s1416_s24, %s1416_s24 }
   0xb   :  { %p1423_p6 = por %p1422_p5, %p1421_p4 }
   0xd   :  { %p1424_p7 = pnand %p1423_p6, %p1417_p3 }
   0xf   :  { %1427 = shalt.err (!%p1424_p7)
}
  0x10   :  { %s1455_s25 = smov 256   ;;  %s1456_s26 = smov 16  }
  0x11   :  { %26 = dma.hbm_to_vmem [thread:$0]  %s1534_s2, 16384, %s21_s16, [#allocation3], %s1455_s25, %s1455_s25, %s1456_s26  }
  0x12   :  { %1450 = dma.done.wait [#allocation3], 16384  }
  0x13   :  { %1451 = vsyncadd [#allocation3], 4294950912  ;;  %v1214_v0 = vld [vmem:[#allocation2 + $0x4] ss:$16 sps:$4 sm:$0xff]   ;;  %v1216_v1 = vld [vmem:[#allocation2 + $0xc] ss:$16 sps:$4 sm:$0xff]   ;;  %v174_v40 = vlaneseq }
  0x14   :  { %831 = vmatprep.subr.bf16.mxu0 %v1214_v0  ;;  %v1218_v2 = vld [vmem:[#allocation2] ss:$16 sps:$4 sm:$0xff]   ;;  %v1219_v3 = vld [vmem:[#allocation2 + $0x8] ss:$16 sps:$4 sm:$0xff]   ;;  %913 = vmatprep.subr.bf16.mxu1 %v1216_v1  ;;  %v1220_v4 = vld [vmem:[#allocation2 + $0x24] ss:$16 sps:$4 sm:$0xff]  }
  0x15   :  { %832 = vmatpush1.bf16.msra.mxu0 %v1218_v2  ;;  %914 = vmatpush1.bf16.msra.mxu1 %v1219_v3  ;;  %v1222_v5 = vld [vmem:[#allocation2 + $0x2c] ss:$16 sps:$4 sm:$0xff]   ;;  %v1224_v6 = vld [vmem:[#allocation2 + $0x20] ss:$16 sps:$4 sm:$0xff]   ;;  %v1225_v7 = vld [vmem:[#allocation2 + $0x28] ss:$16 sps:$4 sm:$0xff]  }
  0x16   :  { %833 = vmatprep.subr.bf16.mxu0 %v1220_v4  ;;  %915 = vmatprep.subr.bf16.mxu1 %v1222_v5  ;;  %v1226_v8 = vld [vmem:[#allocation2 + $0x44] ss:$16 sps:$4 sm:$0xff]   ;;  %v1228_v9 = vld [vmem:[#allocation2 + $0x4c] ss:$16 sps:$4 sm:$0xff]   ;;  %v1230_v10 = vld [vmem:[#allocation2 + $0x40] ss:$16 sps:$4 sm:$0xff]  }
  0x17   :  { %v1231_v11 = vld [vmem:[#allocation2 + $0x48] ss:$16 sps:$4 sm:$0xff]   ;;  %v1232_v12 = vld [vmem:[#allocation2 + $0x64] ss:$16 sps:$4 sm:$0xff]   ;;  %v1234_v13 = vld [vmem:[#allocation2 + $0x6c] ss:$16 sps:$4 sm:$0xff]  }
  0x18   :  { %v1236_v14 = vld [vmem:[#allocation2 + $0x60] ss:$16 sps:$4 sm:$0xff]   ;;  %v1237_v15 = vld [vmem:[#allocation2 + $0x68] ss:$16 sps:$4 sm:$0xff]   ;;  %v1238_v16 = vld [vmem:[#allocation2 + $0x84] ss:$16 sps:$4 sm:$0xff]  }
  0x19   :  { %834 = vmatpush1.bf16.msra.mxu0 %v1224_v6  ;;  %916 = vmatpush1.bf16.msra.mxu1 %v1225_v7  ;;  %v1240_v17 = vld [vmem:[#allocation2 + $0x8c] ss:$16 sps:$4 sm:$0xff]   ;;  %v1242_v18 = vld [vmem:[#allocation2 + $0x80] ss:$16 sps:$4 sm:$0xff]   ;;  %v1243_v19 = vld [vmem:[#allocation2 + $0x88] ss:$16 sps:$4 sm:$0xff]  }
  0x1a   :  { %835 = vmatprep.subr.bf16.mxu0 %v1226_v8  ;;  %917 = vmatprep.subr.bf16.mxu1 %v1228_v9  ;;  %v1244_v20 = vld [vmem:[#allocation2 + $0xa4] ss:$16 sps:$4 sm:$0xff]   ;;  %v1246_v21 = vld [vmem:[#allocation2 + $0xac] ss:$16 sps:$4 sm:$0xff]   ;;  %v1248_v22 = vld [vmem:[#allocation2 + $0xa0] ss:$16 sps:$4 sm:$0xff]  }
  0x1b   :  { %v1249_v23 = vld [vmem:[#allocation2 + $0xa8] ss:$16 sps:$4 sm:$0xff]   ;;  %v1250_v24 = vld [vmem:[#allocation2 + $0xc4] ss:$16 sps:$4 sm:$0xff]   ;;  %v1252_v25 = vld [vmem:[#allocation2 + $0xcc] ss:$16 sps:$4 sm:$0xff]  }
  0x1c   :  { %v1254_v26 = vld [vmem:[#allocation2 + $0xc0] ss:$16 sps:$4 sm:$0xff]   ;;  %v1255_v27 = vld [vmem:[#allocation2 + $0xc8] ss:$16 sps:$4 sm:$0xff]   ;;  %v1256_v28 = vld [vmem:[#allocation2 + $0xe4] ss:$16 sps:$4 sm:$0xff]  }
  0x1d   :  { %836 = vmatpush1.bf16.msra.mxu0 %v1230_v10  ;;  %918 = vmatpush1.bf16.msra.mxu1 %v1231_v11  ;;  %v1258_v29 = vld [vmem:[#allocation2 + $0xec] ss:$16 sps:$4 sm:$0xff]   ;;  %v1260_v30 = vld [vmem:[#allocation2 + $0xe0] ss:$16 sps:$4 sm:$0xff]   ;;  %v1261_v31 = vld [vmem:[#allocation2 + $0xe8] ss:$16 sps:$4 sm:$0xff]  }
  0x1e   :  { %837 = vmatprep.subr.bf16.mxu0 %v1232_v12  ;;  %919 = vmatprep.subr.bf16.mxu1 %v1234_v13  ;;  %v1262_v32 = vld [vmem:[#allocation2 + $0x104] ss:$16 sps:$4 sm:$0xff]   ;;  %v1264_v33 = vld [vmem:[#allocation2 + $0x10c] ss:$16 sps:$4 sm:$0xff]   ;;  %v1266_v34 = vld [vmem:[#allocation2 + $0x100] ss:$16 sps:$4 sm:$0xff]  }
  0x1f   :  { %v1267_v35 = vld [vmem:[#allocation2 + $0x108] ss:$16 sps:$4 sm:$0xff]   ;;  %v1268_v36 = vld [vmem:[#allocation2 + $0x124] ss:$16 sps:$4 sm:$0xff]   ;;  %v1270_v37 = vld [vmem:[#allocation2 + $0x12c] ss:$16 sps:$4 sm:$0xff]  }
  0x20   :  { %v1457_v38 = vmov 1966171168   ;;  %v1272_v41 = vld [vmem:[#allocation2 + $0x120] ss:$16 sps:$4 sm:$0xff]   ;;  %v1273_v42 = vld [vmem:[#allocation2 + $0x128] ss:$16 sps:$4 sm:$0xff]  }
  0x21   :  { %838 = vmatpush1.bf16.msra.mxu0 %v1236_v14  ;;  %920 = vmatpush1.bf16.msra.mxu1 %v1237_v15  ;;  %v172_v39 = vunpack.c.l.s4 %v1457_v38  ;;  %v1274_v43 = vld [vmem:[#allocation2 + $0x144] ss:$16 sps:$4 sm:$0xff]   ;;  %v1276_v44 = vld [vmem:[#allocation2 + $0x14c] ss:$16 sps:$4 sm:$0xff]   ;;  %v1497_v46 = vshrl.u32 %v174_v40, 7  ;;  %s1459_s6 = smov [#allocation5]  }
  0x22   :  { %839 = vmatprep.subr.bf16.mxu0 %v1238_v16  ;;  %921 = vmatprep.subr.bf16.mxu1 %v1240_v17  ;;  %v1278_v47 = vld [vmem:[#allocation2 + $0x140] ss:$16 sps:$4 sm:$0xff]   ;;  %v1279_v48 = vld [vmem:[#allocation2 + $0x148] ss:$16 sps:$4 sm:$0xff]   ;;  %v1280_v49 = vld [vmem:[#allocation2 + $0x164] ss:$16 sps:$4 sm:$0xff]  }
  0x23   :  { %v173_v45 = vunpack.c.0.s8 %v172_v39  ;;  %v1282_v50 = vld [vmem:[#allocation2 + $0x16c] ss:$16 sps:$4 sm:$0xff]   ;;  %v1071_v52 = vld.sshfl [vmem:[%s1533_s1] sm:$0x33 pattern:$0x75316420] }
  0x24   :  { %v1284_v53 = vld [vmem:[#allocation2 + $0x160] ss:$16 sps:$4 sm:$0xff]   ;;  %v1285_v54 = vld [vmem:[#allocation2 + $0x168] ss:$16 sps:$4 sm:$0xff]   ;;  %v170_v55 = vcombine.high %v1071_v52, %v1071_v52  ;;  %v1286_v56 = vld [vmem:[#allocation2 + $0x184] ss:$16 sps:$4 sm:$0xff]  }
  0x25   :  { %840 = vmatpush1.bf16.msra.mxu0 %v1242_v18  ;;  %922 = vmatpush1.bf16.msra.mxu1 %v1243_v19  ;;  %v176_v51 = vsub.s32 %v173_v45, %v1497_v46  ;;  %v1288_v57 = vld [vmem:[#allocation2 + $0x18c] ss:$16 sps:$4 sm:$0xff]   ;;  %v1290_v59 = vld [vmem:[#allocation2 + $0x180] ss:$16 sps:$4 sm:$0xff]   ;;  %v1291_v60 = vld [vmem:[#allocation2 + $0x188] ss:$16 sps:$4 sm:$0xff]  }
  0x26   :  { %841 = vmatprep.subr.bf16.mxu0 %v1244_v20  ;;  %923 = vmatprep.subr.bf16.mxu1 %v1246_v21  ;;  %v1292_v61 = vld [vmem:[#allocation2 + $0x1a4] ss:$16 sps:$4 sm:$0xff]   ;;  %v1294_v62 = vld [vmem:[#allocation2 + $0x1ac] ss:$16 sps:$4 sm:$0xff]   ;;  %v1296_v63 = vld [vmem:[#allocation2 + $0x1a0] ss:$16 sps:$4 sm:$0xff]  }
  0x27   :  { %v184_v58 = vrot.slane %v170_v55, %v176_v51  ;;  %v1297_v0 = vld [vmem:[#allocation2 + $0x1a8] ss:$16 sps:$4 sm:$0xff]   ;;  %v1298_v1 = vld [vmem:[#allocation2 + $0x1c4] ss:$16 sps:$4 sm:$0xff]   ;;  %v1300_v2 = vld [vmem:[#allocation2 + $0x1cc] ss:$16 sps:$4 sm:$0xff]   ;;  %v1503_v12 = vrot.slane %v1071_v52, %v176_v51 }
  0x28   :  { %v1302_v3 = vld [vmem:[#allocation2 + $0x1c0] ss:$16 sps:$4 sm:$0xff]   ;;  %v1303_v4 = vld [vmem:[#allocation2 + $0x1c8] ss:$16 sps:$4 sm:$0xff]   ;;  %v1304_v5 = vld [vmem:[#allocation2 + $0x1e4] ss:$16 sps:$4 sm:$0xff]  }
  0x29   :  { %842 = vmatpush1.bf16.msra.mxu0 %v1248_v22  ;;  %924 = vmatpush1.bf16.msra.mxu1 %v1249_v23  ;;  %v1306_v6 = vld [vmem:[#allocation2 + $0x1ec] ss:$16 sps:$4 sm:$0xff]   ;;  %v1308_v7 = vld [vmem:[#allocation2 + $0x1e0] ss:$16 sps:$4 sm:$0xff]   ;;  %v1309_v8 = vld [vmem:[#allocation2 + $0x1e8] ss:$16 sps:$4 sm:$0xff]   ;;  %v186_v16 = vcombine.high %v184_v58, %v184_v58 }
  0x2a   :  { %843 = vmatprep.subr.bf16.mxu0 %v1250_v24  ;;  %925 = vmatprep.subr.bf16.mxu1 %v1252_v25  ;;  %v1312_v9 = vld [vmem:[#allocation2 + $0x204] ss:$16 sps:$4 sm:$0xff]   ;;  %v1315_v10 = vld [vmem:[#allocation2 + $0x20c] ss:$16 sps:$4 sm:$0xff]   ;;  %v1310_v11 = vld [vmem:[#allocation2 + $0x200] ss:$16 sps:$4 sm:$0xff]  }
  0x2b   :  { %863 = vmatprep.mubr.bf16.mxu0 %v184_v58  ;;  %945 = vmatprep.mubr.bf16.mxu1 %v184_v58  ;;  %v1313_v13 = vld [vmem:[#allocation2 + $0x208] ss:$16 sps:$4 sm:$0xff]   ;;  %v1318_v14 = vld [vmem:[#allocation2 + $0x224] ss:$16 sps:$4 sm:$0xff]   ;;  %v1321_v15 = vld [vmem:[#allocation2 + $0x22c] ss:$16 sps:$4 sm:$0xff]  }
  0x2c   :  { %v1316_v17 = vld [vmem:[#allocation2 + $0x220] ss:$16 sps:$4 sm:$0xff]   ;;  %v1319_v18 = vld [vmem:[#allocation2 + $0x228] ss:$16 sps:$4 sm:$0xff]   ;;  %v1324_v19 = vld [vmem:[#allocation2 + $0x244] ss:$16 sps:$4 sm:$0xff]  }
  0x2d   :  { %844 = vmatpush1.bf16.msra.mxu0 %v1254_v26  ;;  %926 = vmatpush1.bf16.msra.mxu1 %v1255_v27  ;;  %v1327_v20 = vld [vmem:[#allocation2 + $0x24c] ss:$16 sps:$4 sm:$0xff]   ;;  %v1322_v21 = vld [vmem:[#allocation2 + $0x240] ss:$16 sps:$4 sm:$0xff]   ;;  %v1325_v22 = vld [vmem:[#allocation2 + $0x248] ss:$16 sps:$4 sm:$0xff]  }
  0x2e   :  { %845 = vmatprep.subr.bf16.mxu0 %v1256_v28  ;;  %927 = vmatprep.subr.bf16.mxu1 %v1258_v29  ;;  %v1330_v23 = vld [vmem:[#allocation2 + $0x264] ss:$16 sps:$4 sm:$0xff]   ;;  %v1333_v24 = vld [vmem:[#allocation2 + $0x26c] ss:$16 sps:$4 sm:$0xff]   ;;  %v1328_v25 = vld [vmem:[#allocation2 + $0x260] ss:$16 sps:$4 sm:$0xff]  }
  0x2f   :  { %v1331_v26 = vld [vmem:[#allocation2 + $0x268] ss:$16 sps:$4 sm:$0xff]   ;;  %v1336_v27 = vld [vmem:[#allocation2 + $0x284] ss:$16 sps:$4 sm:$0xff]   ;;  %v1339_v28 = vld [vmem:[#allocation2 + $0x28c] ss:$16 sps:$4 sm:$0xff]  }
  0x30   :  { %v1334_v29 = vld [vmem:[#allocation2 + $0x280] ss:$16 sps:$4 sm:$0xff]   ;;  %v1349_v38 = vld [vmem:[#allocation2 + $0x2c8] ss:$16 sps:$4 sm:$0xff]   ;;  %v1354_v39 = vld [vmem:[#allocation2 + $0x2e4] ss:$16 sps:$4 sm:$0xff]  }
  0x31   :  { %846 = vmatpush1.bf16.msra.mxu0 %v1260_v30  ;;  %928 = vmatpush1.bf16.msra.mxu1 %v1261_v31  ;;  %v1337_v30 = vld [vmem:[#allocation2 + $0x288] ss:$16 sps:$4 sm:$0xff]   ;;  %v1342_v31 = vld [vmem:[#allocation2 + $0x2a4] ss:$16 sps:$4 sm:$0xff]   ;;  %v1357_v40 = vld [vmem:[#allocation2 + $0x2ec] ss:$16 sps:$4 sm:$0xff]  }
  0x32   :  { %847 = vmatprep.subr.bf16.mxu0 %v1262_v32  ;;  %929 = vmatprep.subr.bf16.mxu1 %v1264_v33  ;;  %v1345_v32 = vld [vmem:[#allocation2 + $0x2ac] ss:$16 sps:$4 sm:$0xff]   ;;  %v1340_v33 = vld [vmem:[#allocation2 + $0x2a0] ss:$16 sps:$4 sm:$0xff]   ;;  %v1367_v51 = vld [vmem:[#allocation2 + $0x328] ss:$16 sps:$4 sm:$0xff]  }
  0x33   :  { %v1358_v45 = vld [vmem:[#allocation2 + $0x300] ss:$16 sps:$4 sm:$0xff]   ;;  %v1372_v52 = vld [vmem:[#allocation2 + $0x344] ss:$16 sps:$4 sm:$0xff]   ;;  %v1373_v55 = vld [vmem:[#allocation2 + $0x348] ss:$16 sps:$4 sm:$0xff]  }
  0x34   :  { %v1376_v58 = vld [vmem:[#allocation2 + $0x360] ss:$16 sps:$4 sm:$0xff]   ;;  %s1062_s7 = sshll.u32 %s1459_s6, 4  ;;  %s1063_s7 = int_to_ptr.vmem [resolvable:$true] %s1062_s7 }
  0x35   :  { %848 = vmatpush1.bf16.msra.mxu0 %v1266_v34  ;;  %930 = vmatpush1.bf16.msra.mxu1 %v1267_v35  ;;  %v1343_v34 = vld [vmem:[#allocation2 + $0x2a8] ss:$16 sps:$4 sm:$0xff]   ;;  %v1348_v35 = vld [vmem:[#allocation2 + $0x2c4] ss:$16 sps:$4 sm:$0xff]   ;;  %s1428_s8 = scalar_lea.vmem %s1063_s7, 128  ;;  %p1433_p9 = scmp.lt.s32.totalorder %s1063_s7, %s1063_s7 }
  0x36   :  { %849 = vmatprep.subr.bf16.mxu0 %v1268_v36  ;;  %931 = vmatprep.subr.bf16.mxu1 %v1270_v37  ;;  %v1351_v36 = vld [vmem:[#allocation2 + $0x2cc] ss:$16 sps:$4 sm:$0xff]   ;;  %v1346_v37 = vld [vmem:[#allocation2 + $0x2c0] ss:$16 sps:$4 sm:$0xff]   ;;  %p1429_p8 = scmp.ne.s32.totalorder %s1063_s7, %s1428_s8  ;;  %p1434_p10 = scmp.lt.s32.totalorder %s1428_s8, %s1428_s8 }
  0x38   :  { %p1435_p11 = por %p1434_p10, %p1433_p9 }
  0x39   :  { %850 = vmatpush1.bf16.msra.mxu0 %v1272_v41  ;;  %932 = vmatpush1.bf16.msra.mxu1 %v1273_v42  ;;  %v1352_v41 = vld [vmem:[#allocation2 + $0x2e0] ss:$16 sps:$4 sm:$0xff]   ;;  %v1355_v42 = vld [vmem:[#allocation2 + $0x2e8] ss:$16 sps:$4 sm:$0xff]  }
  0x3a   :  { %851 = vmatprep.subr.bf16.mxu0 %v1274_v43  ;;  %933 = vmatprep.subr.bf16.mxu1 %v1276_v44  ;;  %v1360_v43 = vld [vmem:[#allocation2 + $0x304] ss:$16 sps:$4 sm:$0xff]   ;;  %v1363_v44 = vld [vmem:[#allocation2 + $0x30c] ss:$16 sps:$4 sm:$0xff]   ;;  %p1436_p12 = pnand %p1435_p11, %p1429_p8 }
  0x3d   :  { %852 = vmatpush1.bf16.msra.mxu0 %v1278_v47  ;;  %934 = vmatpush1.bf16.msra.mxu1 %v1279_v48  ;;  %v1361_v47 = vld [vmem:[#allocation2 + $0x308] ss:$16 sps:$4 sm:$0xff]   ;;  %v1366_v48 = vld [vmem:[#allocation2 + $0x324] ss:$16 sps:$4 sm:$0xff]  }
  0x3e   :  { %853 = vmatprep.subr.bf16.mxu0 %v1280_v49  ;;  %935 = vmatprep.subr.bf16.mxu1 %v1282_v50  ;;  %v1369_v49 = vld [vmem:[#allocation2 + $0x32c] ss:$16 sps:$4 sm:$0xff]   ;;  %v1364_v50 = vld [vmem:[#allocation2 + $0x320] ss:$16 sps:$4 sm:$0xff]  }
  0x41   :  { %854 = vmatpush1.bf16.msra.mxu0 %v1284_v53  ;;  %936 = vmatpush1.bf16.msra.mxu1 %v1285_v54  ;;  %v1375_v53 = vld [vmem:[#allocation2 + $0x34c] ss:$16 sps:$4 sm:$0xff]   ;;  %v1370_v54 = vld [vmem:[#allocation2 + $0x340] ss:$16 sps:$4 sm:$0xff]  }
  0x42   :  { %855 = vmatprep.subr.bf16.mxu0 %v1286_v56  ;;  %937 = vmatprep.subr.bf16.mxu1 %v1288_v57  ;;  %v1378_v56 = vld [vmem:[#allocation2 + $0x364] ss:$16 sps:$4 sm:$0xff]   ;;  %v1381_v57 = vld [vmem:[#allocation2 + $0x36c] ss:$16 sps:$4 sm:$0xff]  }
  0x45   :  { %856 = vmatpush1.bf16.msra.mxu0 %v1290_v59  ;;  %938 = vmatpush1.bf16.msra.mxu1 %v1291_v60  ;;  %v1379_v59 = vld [vmem:[#allocation2 + $0x368] ss:$16 sps:$4 sm:$0xff]   ;;  %v1384_v60 = vld [vmem:[#allocation2 + $0x384] ss:$16 sps:$4 sm:$0xff]  }
  0x46   :  { %857 = vmatprep.subr.bf16.mxu0 %v1292_v61  ;;  %939 = vmatprep.subr.bf16.mxu1 %v1294_v62  ;;  %v1387_v61 = vld [vmem:[#allocation2 + $0x38c] ss:$16 sps:$4 sm:$0xff]   ;;  %v1382_v62 = vld [vmem:[#allocation2 + $0x380] ss:$16 sps:$4 sm:$0xff]  }
  0x49   :  { %858 = vmatpush1.bf16.msra.mxu0 %v1296_v63  ;;  %940 = vmatpush1.bf16.msra.mxu1 %v1297_v0  ;;  %v1385_v63 = vld [vmem:[#allocation2 + $0x388] ss:$16 sps:$4 sm:$0xff]   ;;  %v1390_v0 = vld [vmem:[#allocation2 + $0x3a4] ss:$16 sps:$4 sm:$0xff]  }
  0x4a   :  { %859 = vmatprep.subr.bf16.mxu0 %v1298_v1  ;;  %941 = vmatprep.subr.bf16.mxu1 %v1300_v2  ;;  %v1393_v1 = vld [vmem:[#allocation2 + $0x3ac] ss:$16 sps:$4 sm:$0xff]   ;;  %v1388_v2 = vld [vmem:[#allocation2 + $0x3a0] ss:$16 sps:$4 sm:$0xff]  }
  0x4d   :  { %860 = vmatpush1.bf16.msra.mxu0 %v1302_v3  ;;  %942 = vmatpush1.bf16.msra.mxu1 %v1303_v4  ;;  %v1391_v3 = vld [vmem:[#allocation2 + $0x3a8] ss:$16 sps:$4 sm:$0xff]   ;;  %v1396_v4 = vld [vmem:[#allocation2 + $0x3c4] ss:$16 sps:$4 sm:$0xff]  }
  0x4e   :  { %861 = vmatprep.subr.bf16.mxu0 %v1304_v5  ;;  %943 = vmatprep.subr.bf16.mxu1 %v1306_v6  ;;  %v1399_v5 = vld [vmem:[#allocation2 + $0x3cc] ss:$16 sps:$4 sm:$0xff]   ;;  %v1394_v6 = vld [vmem:[#allocation2 + $0x3c0] ss:$16 sps:$4 sm:$0xff]  }
  0x51   :  { %862 = vmatpush1.bf16.msra.mxu0 %v1308_v7  ;;  %944 = vmatpush1.bf16.msra.mxu1 %v1309_v8  ;;  %v1397_v7 = vld [vmem:[#allocation2 + $0x3c8] ss:$16 sps:$4 sm:$0xff]   ;;  %v1402_v8 = vld [vmem:[#allocation2 + $0x3e4] ss:$16 sps:$4 sm:$0xff]  }
  0x52   :  { %872 = vmatprep.subr.bf16.mxu0 %v1312_v9  ;;  %954 = vmatprep.subr.bf16.mxu1 %v1315_v10  ;;  %v1405_v9 = vld [vmem:[#allocation2 + $0x3ec] ss:$16 sps:$4 sm:$0xff]   ;;  %v1400_v10 = vld [vmem:[#allocation2 + $0x3e0] ss:$16 sps:$4 sm:$0xff]  }
  0x54   :  { %864 = vmatmul.mubr.bf16.vlgmr.msra.gmra.mrb[0].mxu0 %v1503_v12  ;;  %946 = vmatmul.mubr.bf16.vlgmr.msra.gmra.mrb[0].mxu1 %v1503_v12 }
  0x55   :  { %873 = vmatpush1.bf16.msra.mxu0 %v1310_v11  ;;  %955 = vmatpush1.bf16.msra.mxu1 %v1313_v13  ;;  %v1403_v11 = vld [vmem:[#allocation2 + $0x3e8] ss:$16 sps:$4 sm:$0xff]   ;;  %v185_v13 = vcombine.high %v1503_v12, %v1503_v12 }
  0x56   :  { %874 = vmatprep.subr.bf16.mxu0 %v1318_v14  ;;  %956 = vmatprep.subr.bf16.mxu1 %v1321_v15  ;;  %v1022_v14 = vsub.s32 0, %v1497_v46  ;;  %v1026_v15 = vsub.s32 1, %v1497_v46 }
  0x57   :  { %904 = vmatprep.mubr.bf16.mxu0 %v186_v16  ;;  %986 = vmatprep.mubr.bf16.mxu1 %v186_v16  ;;  %v1030_v16 = vsub.s32 2, %v1497_v46 }
  0x59   :  { %875 = vmatpush1.bf16.msra.mxu0 %v1316_v17  ;;  %957 = vmatpush1.bf16.msra.mxu1 %v1319_v18  ;;  %v1034_v17 = vsub.s32 3, %v1497_v46  ;;  %v1018_v18 = vld [vmem:[%s1535_s3] sm:$0xf] }
  0x5a   :  { %876 = vmatprep.subr.bf16.mxu0 %v1324_v19  ;;  %958 = vmatprep.subr.bf16.mxu1 %v1327_v20  ;;  %v1458_v19 = vmov 1983009808   ;;  %v1027_v12 = vrot.slane %v1018_v18, %v1026_v15 }
  0x5b   :  { %v1002_v20 = vunpack.c.l.s4 %v1458_v19 }
  0x5d   :  { %877 = vmatpush1.bf16.msra.mxu0 %v1322_v21  ;;  %959 = vmatpush1.bf16.msra.mxu1 %v1325_v22  ;;  %v1023_v21 = vrot.slane %v1018_v18, %v1022_v14  ;;  %v1031_v22 = vrot.slane %v1018_v18, %v1030_v16 }
  0x5e   :  { %878 = vmatprep.subr.bf16.mxu0 %v1330_v23  ;;  %960 = vmatprep.subr.bf16.mxu1 %v1333_v24  ;;  %v1035_v23 = vrot.slane %v1018_v18, %v1034_v17  ;;  %v1003_v24 = vunpack.c.0.s8 %v1002_v20 }
  0x61   :  { %879 = vmatpush1.bf16.msra.mxu0 %v1328_v25  ;;  %961 = vmatpush1.bf16.msra.mxu1 %v1331_v26  ;;  %v1036_v25 = vcombine.low %v1023_v21, %v1027_v12  ;;  %v1037_v26 = vcombine.low %v1031_v22, %v1035_v23 }
  0x62   :  { %880 = vmatprep.subr.bf16.mxu0 %v1336_v27  ;;  %962 = vmatprep.subr.bf16.mxu1 %v1339_v28 }
  0x65   :  { %881 = vmatpush1.bf16.msra.mxu0 %v1334_v29  ;;  %963 = vmatpush1.bf16.msra.mxu1 %v1337_v30  ;;  %v1006_v29 = vsub.s32 %v1003_v24, %v1497_v46 }
  0x66   :  { %882 = vmatprep.subr.bf16.mxu0 %v1342_v31  ;;  %964 = vmatprep.subr.bf16.mxu1 %v1345_v32 }
  0x69   :  { %883 = vmatpush1.bf16.msra.mxu0 %v1340_v33  ;;  %965 = vmatpush1.bf16.msra.mxu1 %v1343_v34 }
  0x6a   :  { %884 = vmatprep.subr.bf16.mxu0 %v1348_v35  ;;  %966 = vmatprep.subr.bf16.mxu1 %v1351_v36  ;;  %v1044_v36 = vrot.slane %v1036_v25, %v1006_v29 }
  0x6d   :  { %885 = vmatpush1.bf16.msra.mxu0 %v1346_v37  ;;  %967 = vmatpush1.bf16.msra.mxu1 %v1349_v38  ;;  %v1051_v37 = vrot.slane %v1037_v26, %v1006_v29 }
  0x6e   :  { %886 = vmatprep.subr.bf16.mxu0 %v1354_v39  ;;  %968 = vmatprep.subr.bf16.mxu1 %v1357_v40 }
  0x71   :  { %887 = vmatpush1.bf16.msra.mxu0 %v1352_v41  ;;  %969 = vmatpush1.bf16.msra.mxu1 %v1355_v42  ;;  %v32_v42 = vld [vmem:[%s1532_s0] sm:$0xff] }
  0x72   :  { %888 = vmatprep.subr.bf16.mxu0 %v1360_v43  ;;  %970 = vmatprep.subr.bf16.mxu1 %v1363_v44  ;;  %v1052_v44 = vcombine.low %v1044_v36, %v1051_v37 }
  0x75   :  { %889 = vmatpush1.bf16.msra.mxu0 %v1358_v45  ;;  %971 = vmatpush1.bf16.msra.mxu1 %v1361_v47 }
  0x76   :  { %890 = vmatprep.subr.bf16.mxu0 %v1366_v48  ;;  %972 = vmatprep.subr.bf16.mxu1 %v1369_v49 }
  0x79   :  { %891 = vmatpush1.bf16.msra.mxu0 %v1364_v50  ;;  %973 = vmatpush1.bf16.msra.mxu1 %v1367_v51 }
  0x7a   :  { %892 = vmatprep.subr.bf16.mxu0 %v1372_v52  ;;  %974 = vmatprep.subr.bf16.mxu1 %v1375_v53 }
  0x7d   :  { %893 = vmatpush1.bf16.msra.mxu0 %v1370_v54  ;;  %975 = vmatpush1.bf16.msra.mxu1 %v1373_v55 }
  0x7e   :  { %894 = vmatprep.subr.bf16.mxu0 %v1378_v56  ;;  %976 = vmatprep.subr.bf16.mxu1 %v1381_v57 }
  0x81   :  { %895 = vmatpush1.bf16.msra.mxu0 %v1376_v58  ;;  %977 = vmatpush1.bf16.msra.mxu1 %v1379_v59 }
  0x82   :  { %896 = vmatprep.subr.bf16.mxu0 %v1384_v60  ;;  %978 = vmatprep.subr.bf16.mxu1 %v1387_v61 }
  0x85   :  { %897 = vmatpush1.bf16.msra.mxu0 %v1382_v62  ;;  %979 = vmatpush1.bf16.msra.mxu1 %v1385_v63 }
  0x86   :  { %898 = vmatprep.subr.bf16.mxu0 %v1390_v0  ;;  %980 = vmatprep.subr.bf16.mxu1 %v1393_v1 }
  0x89   :  { %899 = vmatpush1.bf16.msra.mxu0 %v1388_v2  ;;  %981 = vmatpush1.bf16.msra.mxu1 %v1391_v3 }
  0x8a   :  { %900 = vmatprep.subr.bf16.mxu0 %v1396_v4  ;;  %982 = vmatprep.subr.bf16.mxu1 %v1399_v5 }
  0x8d   :  { %901 = vmatpush1.bf16.msra.mxu0 %v1394_v6  ;;  %983 = vmatpush1.bf16.msra.mxu1 %v1397_v7 }
  0x8e   :  { %902 = vmatprep.subr.bf16.mxu0 %v1402_v8  ;;  %984 = vmatprep.subr.bf16.mxu1 %v1405_v9 }
  0x91   :  { %903 = vmatpush1.bf16.msra.mxu0 %v1400_v10  ;;  %985 = vmatpush1.bf16.msra.mxu1 %v1403_v11 }
  0x94   :  { %905 = vmatmul.mubr.bf16.vlgmr.msra.gmra.mrb[0].mxu0 %v185_v13  ;;  %987 = vmatmul.mubr.bf16.vlgmr.msra.gmra.mrb[0].mxu1 %v185_v13 }
 0x167   :  { %v906_v27 = vpop.f32.mrb[0].mxu0  ;;  %v988_v28 = vpop.f32.mrb[0].mxu1 }
 0x168   :  { %v908_v30 = vpop.f32.mrb[1].mxu0  ;;  %v990_v31 = vpop.f32.mrb[1].mxu1 }
 0x169   :  { %v999_v32 = vcombine.low %v906_v27, %v908_v30  ;;  %v1000_v33 = vcombine.low %v988_v28, %v990_v31  ;;  %v910_v34 = vpop.f32.mrb[2].mxu0  ;;  %v992_v35 = vpop.f32.mrb[2].mxu1 }
 0x16a   :  { %v911_v38 = vpop.f32.mrb[3].mxu0  ;;  %v993_v39 = vpop.f32.mrb[3].mxu1 }
 0x16b   :  { %v1007_v40 = vrot.slane %v999_v32, %v1006_v29  ;;  %v1014_v41 = vrot.slane %v1000_v33, %v1006_v29 }
 0x16d   :  { %v1015_v43 = vcombine.low %v1007_v40, %v1014_v41 }
 0x16f   :  { %v1017_v46 = vadd.f32 %v1015_v43, %v32_v42 }
 0x171   :  { %v1054_v45 = vadd.f32 %v1052_v44, %v1017_v46 }
 0x173   :  { %1055 = vst [vmem:[#allocation5] sm:$0xff] %v1054_v45 }
 0x174   :  { %1439 = shalt.err (!%p1436_p12)
}
 0x175   :  { %s1440_s11 = scalar_lea.hbm %s1536_s4, 128 }
 0x176   :  { %p1441_p13 = scmp.ne.s32.totalorder %s1536_s4, %s1440_s11  ;;  %p1444_p0 = scmp.lt.u32.totalorder %s1440_s11, %s1536_s4 }
 0x178   :  { %p1446_p1 = pnand %p1444_p0, %p1441_p13 }
 0x17a   :  { %1449 = shalt.err (!%p1446_p1)
}
 0x17b   :  { %1065 = dma.vmem_to_hbm [thread:$0]  %s1063_s7, 128, %s1536_s4, [#allocation4]  }
 0x17c   :  { %1452 = dma.done.wait [#allocation4], 128  }
 0x17d   :  { %1453 = vsyncadd [#allocation4], 4294967168 }
 0x17e   :  { %1069 = vsyncpa [#allocation3], 1 }
 0x17f   :  { %1070 = vsyncpa [#allocation4], 1 }

</bundles_post_ra>
